<compile_context>
chip_gen: v7x
topology: tpu7x:2x2x1
jax: 0.10.0
libtpu: 0.0.40
codegen_flags: <defaults>
</compile_context>

<pallas_src>
import functools
import numpy as np
import jax
import jax.numpy as jnp
from jax.experimental import pallas as pl
from jax.experimental.pallas import tpu as pltpu


# -----------------------------------------------------------------------------
# Constellation / candidate-vector construction (mirrors __init__/_build_vecs)
# -----------------------------------------------------------------------------
def qpsk_points():
    # Deterministic Gray-labelled QPSK (num_bits_per_symbol = 2).
    return (np.array([1 + 1j, 1 - 1j, -1 + 1j, -1 - 1j], dtype=np.complex64)
            / np.sqrt(2.0)).astype(np.complex64)


def build_vecs(points, num_streams):
    """Numpy port of MaximumLikelihoodDetector._build_vecs."""
    P = points.shape[0]

    def rec(n):
        if n == 1:
            return points[:, None].copy(), np.arange(P)[:, None]
        v, vi = rec(n - 1)
        vecs, vinds = [], []
        for i, p in enumerate(points):
            vecs.append(np.concatenate(
                [np.full((v.shape[0], 1), p, dtype=points.dtype), v], axis=1))
            vinds.append(np.concatenate(
                [np.full((v.shape[0], 1), i, dtype=np.int64), vi], axis=1))
        return np.concatenate(vecs, 0), np.concatenate(vinds, 0)

    vecs, vecs_ind = rec(num_streams)
    c = []
    for p in points:
        cols = [np.where(vecs[:, j] == p)[0] for j in range(num_streams)]
        c.append(np.stack(cols, axis=-1))
    c = np.stack(c, axis=-1)                      # [P^(K-1), K, P]
    return vecs, vecs_ind.astype(np.int32), c.astype(np.int32)


# -----------------------------------------------------------------------------
# Plain-JAX glue: whitening  (inv(cholesky(s)) applied to y and h).
# Hand-rolled (M is tiny & static) so no complex-linalg custom calls are needed.
# -----------------------------------------------------------------------------
def chol_complex(s):
    M = s.shape[-1]
    L = [[None] * M for _ in range(M)]
    zero = jnp.zeros_like(s[..., 0, 0])
    for j in range(M):
        d = s[..., j, j]
        for k in range(j):
            d = d - L[j][k] * jnp.conj(L[j][k])
        d = jnp.sqrt(d.real).astype(s.dtype)
        L[j][j] = d
        for i in range(j + 1, M):
            v = s[..., i, j]
            for k in range(j):
                v = v - L[i][k] * jnp.conj(L[j][k])
            L[i][j] = v / d
    rows = [jnp.stack([L[i][j] if j <= i else zero for j in range(M)], axis=-1)
            for i in range(M)]
    return jnp.stack(rows, axis=-2)


def solve_lower(L, B):
    """Forward substitution: returns L^{-1} @ B  (B: [..., M, N])."""
    M = L.shape[-1]
    xs = []
    for i in range(M):
        acc = B[..., i, :]
        for k in range(i):
            acc = acc - L[..., i, k][..., None] * xs[k]
        xs.append(acc / L[..., i, i][..., None])
    return jnp.stack(xs, axis=-2)


# -----------------------------------------------------------------------------
# Pallas kernel: candidate enumeration + demapping reduction (the hot path)
# -----------------------------------------------------------------------------
def _mld_kernel(f_ref, w_ref, out_ref, *, K, P, method):
    """f_ref: (F, TB) batch-on-lane features, w_ref: (V, F) candidate weights,
    out_ref: (K, P, TB) per-stream symbol logits.

    expo[v, b] = -||y_b - H_b vecs[v]||^2 comes out of a single MXU matmul
    (Gram reformulation); the per-stream reduction exploits the mixed-radix
    structure of the candidate index (stream k's point = digit k of v, base P).
    """
    expo = jnp.dot(w_ref[...], f_ref[...],
                   preferred_element_type=jnp.float32)           # (V, TB)
    tb = expo.shape[-1]
    expo_r = expo.reshape((P,) * K + (tb,))

    if method == 'maxlog' or K == 1:
        for k in range(K):
            red = tuple(ax for ax in range(K) if ax != k)
            out_ref[k] = expo_r if not red else jnp.max(expo_r, axis=red)
    else:
        # 'app': single exp over the whole tile (global per-column max),
        # then K cheap per-subset sum+log reductions.
        # NOTE: a subset whose best candidate lies >~88 below the global max
        # underflows to -inf (the per-subset-max reference stays finite);
        # this does not occur at sane operating points.
        gmax = jnp.max(expo, axis=0, keepdims=True)              # (1, TB)
        p = jnp.exp(expo - gmax)                                 # (V, TB)
        p_r = p.reshape((P,) * K + (tb,))
        for k in range(K):
            red = tuple(ax for ax in range(K) if ax != k)
            out_ref[k] = gmax + jnp.log(jnp.sum(p_r, axis=red))  # (P, TB)


# -----------------------------------------------------------------------------
# Tiling / VMEM-limit selection (chip aware)
# -----------------------------------------------------------------------------
def _vmem_capacity_bytes():
    try:
        return int(pltpu.get_tpu_info().vmem_capacity_bytes)
    except Exception:
        return 64 * 1024 * 1024      # conservative (v7x-sized) fallback


def _choose_tiling(B, V, K, P, n_feat):
    """Pick the batch-tile width TB (lane axis) and a chip-aware VMEM limit.

    TB is always a multiple of 128 (lane-dense blocks), sized against the real
    per-lane-column working set so large batches get few, fat grid steps.  On
    64 MiB-VMEM parts (v7x, 2 TensorCores/chip) the grid is forced to >= 2
    tiles so both cores get work on the "parallel" batch axis.
    """
    vmem_cap = _vmem_capacity_bytes()
    two_cores = vmem_cap <= 80 * 1024 * 1024            # v7x-class part
    vmem_limit = min(int(vmem_cap * 0.70), 112 * 1024 * 1024)
    budget = int(vmem_cap * 0.45)                        # working-set budget

    # Per lane-column f32 bytes: ~4 live (V, .) intermediates (matmul output,
    # exp, relayouts) + double-buffered (n_feat, .) input block + double-
    # buffered (K, P, .) output block.
    per_col = (4 * max(V, 8) + 2 * n_feat + 2 * K * max(P, 8)) * 4
    tb_cap = (budget // per_col) // 128 * 128
    tb_cap = max(128, min(tb_cap, 8192))

    b128 = -(-B // 128) * 128
    tb = min(tb_cap, b128)

    min_tiles = 2 if (two_cores and b128 >= 256) else 1
    if -(-b128 // tb) < min_tiles:
        per_tile = -(-b128 // min_tiles)
        tb = max(128, -(-per_tile // 128) * 128)
    return tb, vmem_limit


# -----------------------------------------------------------------------------
# Wrapper ("forward"):  output='symbol', hard_out=False, with_prior=False
# -----------------------------------------------------------------------------
def ml_detect(y, h, s, vecs, num_points, *, demapping_method='app',
              compute_dtype=jnp.float32, _force_tb=None):
    # compute_dtype=jnp.bfloat16 halves the streamed-feature HBM traffic (MXU
    # takes bf16 operands on v5e/v6e/v7x, accumulation stays f32) but, combined
    # with the Gram-form cancellation, may exceed tight tolerances -> f32 default.
    assert demapping_method in ('app', 'maxlog')
    batch_shape = y.shape[:-1]
    M = y.shape[-1]
    K = h.shape[-1]
    V = vecs.shape[0]
    P = int(num_points)
    assert P ** K == V

    # whitening:  s_inv = inv(cholesky(s));  y <- s_inv @ y;  h <- s_inv @ h
    L = chol_complex(s)
    yw = solve_lower(L, y[..., None])[..., 0]
    hw = solve_lower(L, h)

    B = int(np.prod(batch_shape)) if batch_shape else 1
    yw = yw.reshape(B, M)
    hw = hw.reshape(B, M, K)

    # Gram features, built with the batch already on the last (lane) axis.
    hp = jax.lax.Precision.HIGHEST
    hwc = jnp.conj(hw)
    R = jnp.einsum('bmi,bmj->ijb', hwc, hw, precision=hp)     # (K, K, B) = H^H H
    G = jnp.einsum('bmi,bm->ib', hwc, yw, precision=hp)       # (K, B)    = H^H y
    yn = jnp.sum(jnp.real(yw) ** 2 + jnp.imag(yw) ** 2, axis=-1)[None, :]  # (1, B)

    F = 2 * K * K + 2 * K + 1
    feat = jnp.concatenate([
        jnp.real(R).reshape(K * K, B), jnp.imag(R).reshape(K * K, B),
        jnp.real(G), jnp.imag(G), yn], axis=0)                # (F, B)

    # Candidate matrix W such that  expo = W @ feat = -||y - Hv||^2.
    vre = jnp.real(vecs).astype(jnp.float32)                  # (V, K)
    vim = jnp.imag(vecs).astype(jnp.float32)
    c_rre = vre[:, :, None] * vre[:, None, :] + vim[:, :, None] * vim[:, None, :]
    c_rim = vim[:, :, None] * vre[:, None, :] - vre[:, :, None] * vim[:, None, :]
    w = jnp.concatenate([
        -c_rre.reshape(V, K * K), -c_rim.reshape(V, K * K),
        2.0 * vre, 2.0 * vim, -jnp.ones((V, 1), jnp.float32)], axis=1)   # (V, F)

    TB, vmem_limit = _choose_tiling(B, V, K, P, F)
    if _force_tb is not None:          # test hook: exercise grid > 1
        TB = int(_force_tb)
    B_pad = -(-B // TB) * TB
    if B_pad != B:
        feat = jnp.pad(feat, ((0, 0), (0, B_pad - B)))

    feat = feat.astype(compute_dtype)
    w = w.astype(compute_dtype)

    kernel = functools.partial(_mld_kernel, K=K, P=P, method=demapping_method)
    out = pl.pallas_call(
        kernel,
        out_shape=jax.ShapeDtypeStruct((K, P, B_pad), jnp.float32),  # lane-dense
        grid=(B_pad // TB,),
        in_specs=[
            pl.BlockSpec((F, TB), lambda i: (0, i)),      # streamed per batch tile
            pl.BlockSpec((V, F), lambda i: (0, 0)),       # grid-invariant weights
        ],
        out_specs=pl.BlockSpec((K, P, TB), lambda i: (0, 0, i)),
        compiler_params=pltpu.CompilerParams(
            dimension_semantics=("parallel",),
            vmem_limit_bytes=vmem_limit),
    )(feat, w)

    return jnp.transpose(out[:, :, :B], (2, 0, 1)).reshape(*batch_shape, K, P)


# -----------------------------------------------------------------------------
# Pure-JAX reference (follows the module semantics directly) for verification
# -----------------------------------------------------------------------------
def ml_detect_ref(y, h, s, vecs_c, c, *, demapping_method='app'):
    L = chol_complex(s)
    yw = solve_lower(L, y[..., None])[..., 0]
    hw = solve_lower(L, h)
    hv = jnp.einsum('...mk,vk->...vm', hw, vecs_c,
                    precision=jax.lax.Precision.HIGHEST)
    diff = yw[..., None, :] - hv
    exponents = -jnp.sum(diff.real ** 2 + diff.imag ** 2, axis=-1)   # (..., V)
    expg = exponents[..., c]                                          # (..., P^(K-1), K, P)
    if demapping_method == 'app':
        return jax.scipy.special.logsumexp(expg, axis=-3)
    return jnp.max(expg, axis=-3)


if __name__ == "__main__":
    # Small, deterministic configuration.
    M = 4                  # rx antennas
    K = 2                  # num_streams
    points = qpsk_points()                     # P = 4
    P = points.shape[0]
    vecs_np, vecs_ind_np, c_np = build_vecs(points, K)   # V = P**K = 16
    V = vecs_np.shape[0]
    vecs_j = jnp.asarray(vecs_np)
    c_j = jnp.asarray(c_np, dtype=jnp.int32)

    def make_inputs(batch_dims, seed=0):
        key = jax.random.PRNGKey(seed)
        k1, k2, k3, k4, k5, k6 = jax.random.split(key, 6)

        def cnormal(kr, ki, shape):
            return (jax.random.normal(kr, shape, dtype=jnp.float32)
                    + 1j * jax.random.normal(ki, shape, dtype=jnp.float32)
                    ).astype(jnp.complex64)

        y = cnormal(k1, k2, (*batch_dims, M))
        h = cnormal(k3, k4, (*batch_dims, M, K))
        A = cnormal(k5, k6, (*batch_dims, M, M))
        eye = jnp.eye(M, dtype=jnp.complex64)
        s = jnp.einsum('...ij,...kj->...ik', A, jnp.conj(A)) + M * eye  # Hermitian PD
        return y, h, s

    # 1) small batch, both demapping methods, single tile.
    y, h, s = make_inputs((2, 8))
    for method in ('app', 'maxlog'):
        logits = jax.block_until_ready(
            ml_detect(y, h, s, vecs_j, P, demapping_method=method))
        ref = jax.block_until_ready(
            ml_detect_ref(y, h, s, vecs_j, c_j, demapping_method=method))
        np.testing.assert_allclose(np.asarray(logits), np.asarray(ref),
                                   rtol=2e-3, atol=2e-3)
        assert logits.shape == (2, 8, K, P)

    # 2) larger batch with a forced 128-wide tile to exercise grid > 1.
    y2, h2, s2 = make_inputs((2, 160), seed=0)
    logits2 = jax.block_until_ready(
        ml_detect(y2, h2, s2, vecs_j, P, demapping_method='app', _force_tb=128))
    ref2 = jax.block_until_ready(
        ml_detect_ref(y2, h2, s2, vecs_j, c_j, demapping_method='app'))
    np.testing.assert_allclose(np.asarray(logits2), np.asarray(ref2),
                               rtol=2e-3, atol=2e-3)
    assert logits2.shape == (2, 160, K, P)

    print("KERNEL_OK")
</pallas_src>

<mosaic_0001>
module attributes {stable_mosaic.version = 11 : i64} {
  func.func @_mld_kernel(%arg0: i32, %arg1: memref<13x128xf32, #tpu.memory_space<vmem>>, %arg2: memref<16x13xf32, #tpu.memory_space<vmem>>, %arg3: memref<2x4x128xf32, #tpu.memory_space<vmem>>) attributes {dimension_semantics = [#tpu.dimension_semantics<parallel>], iteration_bounds = array<i64: 1>, scalar_prefetch = 0 : i64, scratch_operands = 0 : i64, tpu.core_type = #tpu.core_type<tc>, window_params = [{transform_indices = @transform_0, window_bounds = array<i64: 13, 128>}, {pipeline_mode = #tpu.pipeline_mode<synchronous>, transform_indices = @transform_1, window_bounds = array<i64: 16, 13>}, {transform_indices = @transform_2, window_bounds = array<i64: 2, 4, 128>}]} {
    %c0 = arith.constant 0 : index
    %c0_0 = arith.constant 0 : index
    %0 = vector.load %arg2[%c0, %c0_0] : memref<16x13xf32, #tpu.memory_space<vmem>>, vector<16x13xf32>
    %c0_1 = arith.constant 0 : index
    %c0_2 = arith.constant 0 : index
    %1 = vector.load %arg1[%c0_1, %c0_2] : memref<13x128xf32, #tpu.memory_space<vmem>>, vector<13x128xf32>
    %cst = arith.constant dense<0.000000e+00> : vector<16x128xf32>
    %2 = tpu.matmul %0, %1, %cst {dimension_numbers = #tpu.dot_dimension_numbers<[1], [0], [0], [1], [0, 0, 1, 1], [], []>} : vector<16x13xf32>, vector<13x128xf32>, vector<16x128xf32> -> vector<16x128xf32>
    %cst_3 = arith.constant dense<0xFF800000> : vector<128xf32>
    %3 = vector.multi_reduction <maximumf>, %2, %cst_3 [0] : vector<16x128xf32> to vector<128xf32>
    %4 = vector.shape_cast %3 : vector<128xf32> to vector<1x128xf32>
    %5 = vector.broadcast %4 : vector<1x128xf32> to vector<16x128xf32>
    %6 = arith.subf %2, %5 : vector<16x128xf32>
    %7 = math.exp %6 : vector<16x128xf32>
    %8 = vector.shape_cast %7 : vector<16x128xf32> to vector<4x4x128xf32>
    %cst_4 = arith.constant dense<0.000000e+00> : vector<4x128xf32>
    %9 = vector.multi_reduction <add>, %8, %cst_4 [1] : vector<4x4x128xf32> to vector<4x128xf32>
    %10 = math.log %9 : vector<4x128xf32>
    %11 = vector.broadcast %4 : vector<1x128xf32> to vector<4x128xf32>
    %12 = arith.addf %11, %10 : vector<4x128xf32>
    %c0_5 = arith.constant 0 : index
    %c0_6 = arith.constant 0 : index
    %c0_7 = arith.constant 0 : index
    %13 = vector.load %arg3[%c0_5, %c0_6, %c0_7] : memref<2x4x128xf32, #tpu.memory_space<vmem>>, vector<1x4x128xf32>
    %14 = vector.shape_cast %13 : vector<1x4x128xf32> to vector<4x128xf32>
    %15 = vector.shape_cast %12 : vector<4x128xf32> to vector<1x4x128xf32>
    tpu.vector_store %arg3[%c0_5, %c0_6, %c0_7], %15 {strides = array<i32>} : memref<2x4x128xf32, #tpu.memory_space<vmem>>, vector<1x4x128xf32>,
    %cst_8 = arith.constant dense<0.000000e+00> : vector<4x128xf32>
    %16 = vector.multi_reduction <add>, %8, %cst_8 [0] : vector<4x4x128xf32> to vector<4x128xf32>
    %17 = math.log %16 : vector<4x128xf32>
    %18 = vector.broadcast %4 : vector<1x128xf32> to vector<4x128xf32>
    %19 = arith.addf %18, %17 : vector<4x128xf32>
    %c1 = arith.constant 1 : index
    %c0_9 = arith.constant 0 : index
    %c0_10 = arith.constant 0 : index
    %20 = vector.load %arg3[%c1, %c0_9, %c0_10] : memref<2x4x128xf32, #tpu.memory_space<vmem>>, vector<1x4x128xf32>
    %21 = vector.shape_cast %20 : vector<1x4x128xf32> to vector<4x128xf32>
    %22 = vector.shape_cast %19 : vector<4x128xf32> to vector<1x4x128xf32>
    tpu.vector_store %arg3[%c1, %c0_9, %c0_10], %22 {strides = array<i32>} : memref<2x4x128xf32, #tpu.memory_space<vmem>>, vector<1x4x128xf32>,
    return
  }
  func.func @transform_0(%arg0: i32) -> (i32, i32) {
    %c0_i32 = arith.constant 0 : i32
    %c0_i32_0 = arith.constant 0 : i32
    return %c0_i32, %arg0 : i32, i32
  }
  func.func @transform_1(%arg0: i32) -> (i32, i32) {
    %c0_i32 = arith.constant 0 : i32
    %c0_i32_0 = arith.constant 0 : i32
    %c0_i32_1 = arith.constant 0 : i32
    return %c0_i32, %c0_i32_0 : i32, i32
  }
  func.func @transform_2(%arg0: i32) -> (i32, i32, i32) {
    %c0_i32 = arith.constant 0 : i32
    %c0_i32_0 = arith.constant 0 : i32
    %c0_i32_1 = arith.constant 0 : i32
    return %c0_i32, %c0_i32_0, %arg0 : i32, i32, i32
  }
}

</mosaic_0001>

<bundles_post_ra>
// kernel: tpu_custom_call.1
= control target key start
LH: loop header
LB: loop body
LE: loop exit
PB: predicated region body
PF: predicated region fallthrough
CT: control target
= control target key end

     0   :  { %7 = vsyncpa [#allocation3], 0  ;;  %s404_s0 = inlined_call_operand.hbm [shape: f32[13,128], index: 0, kind: input, shape index: {}]   ;;  %s405_s1 = inlined_call_operand.hbm [shape: f32[16,13], index: 1, kind: input, shape index: {}]   ;;  %s406_s2 = inlined_call_operand.hbm [shape: f32[2,4,128], index: 2, kind: output, shape index: {}]  }
   0x1   :  { %8 = vsyncpa [#allocation6], 0 }
   0x2   :  { %9 = vsyncpa [#allocation4], 0  ;;  %s339_s9 = smov [#allocation2]   ;;  %s267_s13 = scalar_lea.hbm %s404_s0, 256 }
   0x3   :  { %s15_s10 = sshll.u32 %s339_s9, 4  ;;  %p268_p0 = scmp.ne.s32.totalorder %s404_s0, %s267_s13  ;;  %s16_s10 = int_to_ptr.vmem [resolvable:$true] %s15_s10 }
   0x4   :  { %p271_p1 = scmp.lt.u32.totalorder %s267_s13, %s404_s0 }
   0x6   :  { %p273_p2 = pnand %p271_p1, %p268_p0 }
   0x8   :  { %276 = shalt.err (!%p273_p2)
}
   0x9   :  { %s277_s18 = scalar_lea.vmem %s16_s10, 256  ;;  %p282_p4 = scmp.lt.s32.totalorder %s16_s10, %s16_s10 }
   0xa   :  { %p278_p3 = scmp.ne.s32.totalorder %s16_s10, %s277_s18  ;;  %p283_p5 = scmp.lt.s32.totalorder %s277_s18, %s277_s18 }
   0xc   :  { %p284_p6 = por %p283_p5, %p282_p4 }
   0xe   :  { %p285_p7 = pnand %p284_p6, %p278_p3 }
  0x10   :  { %288 = shalt.err (!%p285_p7)
}
  0x11   :  { %s340_s19 = smov 128   ;;  %s341_s20 = smov 8  }
  0x12   :  { %21 = dma.hbm_to_vmem [thread:$0]  %s404_s0, 256, %s16_s10, [#allocation3], %s340_s19, %s340_s19, %s341_s20  }
  0x13   :  { %s342_s23 = smov [#allocation5]   ;;  %s289_s27 = scalar_lea.hbm %s405_s1, 256 }
  0x14   :  { %s27_s24 = sshll.u32 %s342_s23, 4  ;;  %p290_p8 = scmp.ne.s32.totalorder %s405_s1, %s289_s27  ;;  %s28_s24 = int_to_ptr.vmem [resolvable:$true] %s27_s24 }
  0x15   :  { %p293_p9 = scmp.lt.u32.totalorder %s289_s27, %s405_s1 }
  0x17   :  { %p295_p10 = pnand %p293_p9, %p290_p8 }
  0x19   :  { %298 = shalt.err (!%p295_p10)
}
  0x1a   :  { %s299_s4 = scalar_lea.vmem %s28_s24, 256  ;;  %p304_p12 = scmp.lt.s32.totalorder %s28_s24, %s28_s24 }
  0x1b   :  { %p300_p11 = scmp.ne.s32.totalorder %s28_s24, %s299_s4  ;;  %p305_p13 = scmp.lt.s32.totalorder %s299_s4, %s299_s4 }
  0x1d   :  { %p306_p0 = por %p305_p13, %p304_p12 }
  0x1f   :  { %p307_p1 = pnand %p306_p0, %p300_p11 }
  0x21   :  { %310 = shalt.err (!%p307_p1)
}
  0x22   :  { %33 = dma.hbm_to_vmem [thread:$0]  %s405_s1, 256, %s28_s24, [#allocation6], %s340_s19, %s340_s19, %s341_s20  }
  0x23   :  { %333 = dma.done.wait [#allocation3], 256  }
  0x24   :  { %334 = vsyncadd [#allocation3], 4294967040 }
  0x25   :  { %335 = dma.done.wait [#allocation6], 256  }
  0x26   :  { %336 = vsyncadd [#allocation6], 4294967040  ;;  %vm51_vm0 = vcmask 1044480   ;;  %vm44_vm1 = vcmask 105472   ;;  %vm343_vm2 = vmmov 1   ;;  %v42_v0 = vld [vmem:[#allocation2] sm:$0xff] }
  0x27   :  { %vm240_vm3 = vmpackc.low %vm51_vm0, %vm343_vm2  ;;  %v43_v1 = vld [vmem:[#allocation2 + $0x8] sm:$0x1f]  ;;  %v40_v2 = vld [vmem:[#allocation5] sm:$0xff]  ;;  %vm149_vm4 = vcmask 1043456   ;;  %vm190_vm5 = vcmask 1041409   ;;  %vm192_vm6 = vcmask 1042434  }
  0x28   :  { %v239_v3 = vpack.c.bf16 %v43_v1, %v42_v0  ;;  %236 = vmatprep.mubr.msk.f32.mxu0 %vm44_vm1, %v40_v2  ;;  %v41_v4 = vld [vmem:[#allocation5 + $0x8] sm:$0xff]  ;;  %vm194_vm7 = vcmask 1043459   ;;  %s344_s1 = smov [#allocation7]  }
  0x29   :  { %s212_s6 = sshll.u32 %s344_s1, 4  ;;  %s213_s6 = int_to_ptr.vmem [resolvable:$true] %s212_s6 }
  0x2a   :  { %241 = vmatprep.subr.msk.bf16.mxu0 %vm240_vm3, %v239_v3  ;;  %s311_s7 = scalar_lea.vmem %s213_s6, 128  ;;  %p316_p3 = scmp.lt.s32.totalorder %s213_s6, %s213_s6 }
  0x2b   :  { %244 = vmatpush3.bf16.msk.msra.mxu0 %vm240_vm3, %v239_v3  ;;  %p312_p2 = scmp.ne.s32.totalorder %s213_s6, %s311_s7  ;;  %p317_p4 = scmp.lt.s32.totalorder %s311_s7, %s311_s7 }
  0x2d   :  { %p318_p5 = por %p317_p4, %p316_p3 }
  0x2e   :  { %237 = vmatmul.mubr.msk.f32.vlgmr.msra.gmra.mrb[0].mxu0 %vm44_vm1, %v41_v4 }
  0x2f   :  { %p319_p6 = pnand %p318_p5, %p312_p2 }
 0x101   :  { %v238_v5 = vpop.f32.mrb[0].mxu0 }
 0x102   :  { %v121_v6 = vpop.f32.mrb[1].mxu0 }
 0x103   :  { %v130_v7 = vmax.f32 %v121_v6, %v238_v5 }
 0x105   :  { %v131_v8 = vrot.slane %v130_v7, 4 }
 0x107   :  { %v132_v9 = vmax.f32 %v130_v7, %v131_v8 }
 0x109   :  { %v133_v10 = vrot.slane %v132_v9, 2 }
 0x10b   :  { %v134_v11 = vmax.f32 %v132_v9, %v133_v10 }
 0x10d   :  { %v135_v12 = vrot.slane %v134_v11, 1 }
 0x10f   :  { %v386_v13 = vmax.f32 %v134_v11, %v135_v12 }
 0x111   :  { %v137_v14 = vsub.f32 %v121_v6, %v386_v13  ;;  %v138_v15 = vsub.f32 %v238_v5, %v386_v13 }
 0x113   :  { %v139_v16 = vmul.f32 1.442695, %v137_v14  ;;  %v141_v17 = vmul.f32 1.442695, %v138_v15 }
 0x115   :  { %253 = vpow2.f32 %v139_v16 }
 0x116   :  { %255 = vpow2.f32 %v141_v17 }
 0x11f   :  { %v254_v18 = vpop.eup %253 }
 0x120   :  { %v256_v19 = vpop.eup %255  ;;  %v145_v20 = vcombine.high %v254_v18, %v254_v18  ;;  %v150_v21 = vsel %vm149_vm4, %v254_v18, 0.0 }
 0x121   :  { %v151_v22 = vrot.slane %v150_v21, 4  ;;  %v164_v23 = vsel %vm149_vm4, %v256_v19, 0.0  ;;  %v146_v24 = vcombine.high %v256_v19, %v256_v19 }
 0x122   :  { %v157_v25 = vsel %vm149_vm4, %v145_v20, 0.0  ;;  %v165_v26 = vrot.slane %v164_v23, 4 }
 0x123   :  { %v152_v27 = vadd.f32 %v151_v22, %v150_v21  ;;  %v158_v28 = vrot.slane %v157_v25, 4  ;;  %v199_v29 = vadd.f32 %v157_v25, %v150_v21  ;;  %v171_v30 = vsel %vm149_vm4, %v146_v24, 0.0 }
 0x124   :  { %v166_v31 = vadd.f32 %v165_v26, %v164_v23  ;;  %v172_v32 = vrot.slane %v171_v30, 4 }
 0x125   :  { %v153_v33 = vrot.slane %v152_v27, 2  ;;  %v159_v34 = vadd.f32 %v158_v28, %v157_v25  ;;  %v200_v35 = vadd.f32 %v199_v29, %v164_v23 }
 0x126   :  { %v167_v36 = vrot.slane %v166_v31, 2  ;;  %v173_v37 = vadd.f32 %v172_v32, %v171_v30 }
 0x127   :  { %v154_v38 = vadd.f32 %v153_v33, %v152_v27  ;;  %v160_v39 = vrot.slane %v159_v34, 2  ;;  %v201_v40 = vadd.f32 %v200_v35, %v171_v30 }
 0x128   :  { %v168_v41 = vadd.f32 %v167_v36, %v166_v31  ;;  %v174_v42 = vrot.slane %v173_v37, 2 }
 0x129   :  { %v155_v43 = vrot.slane %v154_v38, 1  ;;  %v161_v44 = vadd.f32 %v160_v39, %v159_v34  ;;  %257 = vlog2.f32 %v201_v40 }
 0x12a   :  { %v169_v45 = vrot.slane %v168_v41, 1  ;;  %v175_v46 = vadd.f32 %v174_v42, %v173_v37 }
 0x12b   :  { %v156_v47 = vadd.f32 %v155_v43, %v154_v38  ;;  %v162_v48 = vrot.slane %v161_v44, 1 }
 0x12c   :  { %v170_v49 = vadd.f32 %v169_v45, %v168_v41  ;;  %v176_v50 = vrot.slane %v175_v46, 1 }
 0x12d   :  { %v163_v51 = vadd.f32 %v162_v48, %v161_v44  ;;  %259 = vlog2.f32 %v156_v47 }
 0x12e   :  { %v177_v52 = vadd.f32 %v176_v50, %v175_v46  ;;  %261 = vlog2.f32 %v170_v49 }
 0x12f   :  { %263 = vlog2.f32 %v163_v51 }
 0x130   :  { %265 = vlog2.f32 %v177_v52 }
 0x133   :  { %v258_v53 = vpop.eup %257 }
 0x134   :  { %v203_v54 = vmul.f32 0.6931472, %v258_v53 }
 0x136   :  { %v204_v55 = vadd.f32 %v203_v54, %v386_v13 }
 0x137   :  { %v260_v56 = vpop.eup %259 }
 0x138   :  { %v262_v57 = vpop.eup %261  ;;  %206 = vst [vmem:[#allocation7 + $0x4] sm:$0xf] %v204_v55  ;;  %v179_v60 = vmul.f32 0.6931472, %v260_v56 }
 0x139   :  { %v264_v58 = vpop.eup %263  ;;  %v183_v62 = vmul.f32 0.6931472, %v262_v57 }
 0x13a   :  { %v266_v59 = vpop.eup %265  ;;  %v181_v61 = vmul.f32 0.6931472, %v264_v58 }
 0x13b   :  { %v185_v63 = vmul.f32 0.6931472, %v266_v59 }
 0x13c   :  { %v191_v0 = vsel %vm190_vm5, %v181_v61, %v179_v60 }
 0x13d   :  { %v193_v1 = vsel %vm192_vm6, %v183_v62, %v191_v0 }
 0x13e   :  { %v195_v2 = vsel %vm194_vm7, %v185_v63, %v193_v1 }
 0x13f   :  { %v197_v3 = vadd.f32 %v195_v2, %v386_v13 }
 0x141   :  { %198 = vst [vmem:[#allocation7] sm:$0xf] %v197_v3 }
 0x142   :  { %322 = shalt.err (!%p319_p6)
}
 0x143   :  { %s323_s10 = scalar_lea.hbm %s406_s2, 128 }
 0x144   :  { %p324_p7 = scmp.ne.s32.totalorder %s406_s2, %s323_s10  ;;  %p327_p8 = scmp.lt.u32.totalorder %s323_s10, %s406_s2 }
 0x146   :  { %p329_p9 = pnand %p327_p8, %p324_p7 }
 0x148   :  { %332 = shalt.err (!%p329_p9)
}
 0x149   :  { %s345_s15 = smov 64   ;;  %s346_s16 = smov 4  }
 0x14a   :  { %218 = dma.vmem_to_hbm [thread:$0]  %s213_s6, 128, %s406_s2, [#allocation4], %s345_s15, %s345_s15, %s346_s16  }
 0x14b   :  { %337 = dma.done.wait [#allocation4], 128  }
 0x14c   :  { %338 = vsyncadd [#allocation4], 4294967168 }
 0x14d   :  { %222 = vsyncpa [#allocation3], 1 }
 0x14e   :  { %223 = vsyncpa [#allocation6], 1 }
 0x14f   :  { %224 = vsyncpa [#allocation4], 1 }

</bundles_post_ra>
